<compile_context>
chip_gen: v7x
topology: tpu7x:2x2x1
jax: 0.10.0
libtpu: 0.0.40
codegen_flags: <defaults>
</compile_context>

<pallas_src>
import math

import jax
import jax.numpy as jnp
from jax.experimental import pallas as pl
from jax.experimental.pallas import tpu as pltpu


def _round_up(v, m):
    return (v + m - 1) // m * m


def _make_lsoftmax_kernel(margin: int, lambdas: float, class_axis: int, tn: int):
    # Static (compile-time) coefficients, mirroring the PyTorch module buffers.
    n_terms = margin // 2 + 1
    half_m = margin // 2
    odd = margin % 2
    c_m_2n = [float(math.comb(margin, 2 * n)) for n in range(n_terms)]   # binom(m, 0,2,4,...)
    signs = [1.0 if n % 2 == 0 else -1.0 for n in range(n_terms)]        # +1,-1,+1,...
    # k = floor(acos(cos)*m/pi) without acos: cos monotone decreasing on [0, pi], so
    # theta >= j*pi/m  <=>  cos(theta) <= cos(j*pi/m).
    thresholds = [math.cos(j * math.pi / margin) for j in range(1, margin)]
    eps = 1e-7
    inv_1p_lambda = 1.0 / (1.0 + lambdas)

    def kernel(x_ref, w_ref, xn_ref, wyn_ref, lyi_ref, t_ref, o_ref):
        # (TM, TN) logits for this (batch, class) tile on the MXU, f32 accumulate.
        logit = jnp.dot(x_ref[...], w_ref[...], preferred_element_type=jnp.float32)
        TM, TN = logit.shape

        # Global class indices of this tile.  one_hot marks each row's target column and is
        # all-False in class tiles that do not contain the target, so fyi (garbage there) is
        # simply never written -> class tiling stays correct.
        c0 = pl.program_id(class_axis) * tn
        cls_idx = c0 + jax.lax.broadcasted_iota(jnp.int32, (TM, TN), 1)
        one_hot = cls_idx == t_ref[...]                       # (TM, TN)

        # Per-row f32 scalars, precomputed in the wrapper (no full-tile reductions in-kernel).
        x_norm = xn_ref[...]                                   # (TM, 1)
        wyi_norm = wyn_ref[...]                                # (TM, 1)
        logit_yi = lyi_ref[...]                                # (TM, 1)  f32 target-column dot

        wx_norm = wyi_norm * x_norm
        cos_theta = logit_yi / (wx_norm + 1e-10)
        # Clamp BEFORE cos^2 / sin^2: with a bf16 MXU |cos| could drift past 1.
        cos_c = jnp.clip(cos_theta, -1.0 + eps, 1.0 - eps)

        # cos(m*theta) binomial expansion; cos^2 / sin^2 powers built incrementally.
        cos2 = cos_c * cos_c
        sin2 = 1.0 - cos2
        cos2_pows = [jnp.ones_like(cos2)]
        sin2_pows = [jnp.ones_like(sin2)]
        for _ in range(half_m):
            cos2_pows.append(cos2_pows[-1] * cos2)
            sin2_pows.append(sin2_pows[-1] * sin2)
        cos_m_theta = jnp.zeros_like(cos_c)
        for n in range(n_terms):
            cos_m_theta = cos_m_theta + (signs[n] * c_m_2n[n]) \
                          * cos2_pows[half_m - n] * sin2_pows[n]
        if odd:
            cos_m_theta = cos_m_theta * cos_c

        # k = floor(acos(cos)*m/pi) via static cos thresholds (no acos in-kernel).
        k = jnp.zeros_like(cos_c)
        for thr in thresholds:
            k = k + jnp.where(cos_c <= thr, 1.0, 0.0)
        sign_k = 1.0 - 2.0 * (k % 2.0)                         # (-1)^k for integer-valued float k
        psi_theta = sign_k * cos_m_theta - 2.0 * k
        fyi = (wx_norm * psi_theta + lambdas * logit_yi) * inv_1p_lambda   # (TM, 1)

        # logit[i, targets[i]] = fyi[i]   (single select on the store path)
        o_ref[...] = jnp.where(one_hot, fyi, logit)

    return kernel


def prepare_lsoftmax_weight(weight, *, mxu_dtype=jnp.bfloat16, tn=512):
    """One-time weight preparation (hoisted out of the per-call forward).

    Pads the weight to (Dp, Cp) with Dp a multiple of 128 and Cp a multiple of 256
    (v6e/v7x MXU width), casts it to the MXU dtype, and precomputes the column L2 norms.
    Cache the result across forward calls.
    """
    weight = weight.astype(jnp.float32)
    D, C = weight.shape
    Dp = _round_up(D, 128)                        # lane-aligned contraction dim
    Cp = _round_up(max(C, 256), 256)              # MXU-width-aligned class dim
    TN = min(_round_up(tn, 128), Cp)              # class tile width
    Cp = _round_up(Cp, TN)                        # make TN divide Cp
    if (Dp, Cp) != (D, C):
        w_p = jnp.zeros((Dp, Cp), jnp.float32).at[:D, :C].set(weight)
    else:
        w_p = weight
    col_norm = jnp.sqrt(jnp.sum(weight * weight, axis=0))     # (C,) f32, computed once
    return dict(w_f32=weight, w_mx=w_p.astype(mxu_dtype), col_norm=col_norm,
                mxu_dtype=mxu_dtype, D=D, C=C, Dp=Dp, Cp=Cp, TN=TN)


def lsoftmax_linear(x, targets, prepared, margin, lambdas, *, tm=256):
    """Pallas forward of LSoftmaxLinear. Returns (N, num_classes) float32 logits."""
    N, D = x.shape
    assert D == prepared["D"]
    C, Dp, Cp, TN = prepared["C"], prepared["Dp"], prepared["Cp"], prepared["TN"]
    mxu_dtype = prepared["mxu_dtype"]
    item = jnp.dtype(mxu_dtype).itemsize

    x = x.astype(jnp.float32)
    targets = targets.astype(jnp.int32)

    # Per-row scalars in f32 (cheap O(N*D) wrapper work); keeps the margin math at full
    # precision even on the bf16 MXU path and removes full-tile reductions from the kernel.
    x_norm = jnp.sqrt(jnp.sum(x * x, axis=1, keepdims=True))                 # (N, 1)
    w_y = prepared["w_f32"][:, targets]                                      # (D, N)
    logit_yi = jnp.sum(x * w_y.T, axis=1, keepdims=True)                     # (N, 1) f32 target dot
    wyi_norm = prepared["col_norm"][targets][:, None]                        # (N, 1)

    TM = min(_round_up(tm, 8), _round_up(N, 8))
    Np = _round_up(N, TM)

    # Pad / cast per-call inputs only when actually needed.
    if (Np, Dp) != (N, D):
        x_mx = jnp.zeros((Np, Dp), mxu_dtype).at[:N, :D].set(x.astype(mxu_dtype))
    else:
        x_mx = x.astype(mxu_dtype)

    def _pad_rows(a):
        if a.shape[0] == Np:
            return a
        return jnp.zeros((Np,) + a.shape[1:], a.dtype).at[:a.shape[0]].set(a)

    x_norm_p = _pad_rows(x_norm)
    wyi_norm_p = _pad_rows(wyi_norm)
    logit_yi_p = _pad_rows(logit_yi)
    t_p = _pad_rows(targets[:, None])

    nb, nc = Np // TM, Cp // TN

    # Grid order: the operand whose index_map varies along the inner axis gets re-DMA'd every
    # outer iteration; pick the order that re-streams the fewer total bytes from HBM.
    restream_w = nb * Dp * Cp * item + Np * Dp * item     # batch outer  (weight re-streamed)
    restream_x = nc * Np * Dp * item + Dp * Cp * item     # class outer  (x re-streamed)
    batch_outer = restream_w <= restream_x
    if batch_outer:
        grid, class_axis = (nb, nc), 1
        xmap = lambda b, c: (b, 0)
        wmap = lambda b, c: (0, c)
        rmap = lambda b, c: (b, 0)
        omap = lambda b, c: (b, c)
    else:
        grid, class_axis = (nc, nb), 0
        xmap = lambda c, b: (b, 0)
        wmap = lambda c, b: (0, c)
        rmap = lambda c, b: (b, 0)
        omap = lambda c, b: (b, c)

    kernel = _make_lsoftmax_kernel(int(margin), float(lambdas), class_axis, TN)

    # VMEM budget: double-buffered x / weight / output tiles + row scalars, 2x headroom for
    # in-kernel temporaries, capped at ~85% of this generation's physical VMEM capacity.
    est = (2 * TM * Dp * item          # x tiles
           + 2 * Dp * TN * item        # weight tiles
           + 2 * TM * TN * 4           # output tiles
           + 2 * 4 * TM * 4)           # per-row scalar tiles
    try:
        vmem_cap = pltpu.get_tpu_info().vmem_capacity_bytes
    except Exception:
        vmem_cap = 64 * 2 ** 20
    vmem_limit = int(min(max(2 * est, 32 * 2 ** 20), int(0.85 * vmem_cap)))

    out = pl.pallas_call(
        kernel,
        out_shape=jax.ShapeDtypeStruct((Np, Cp), jnp.float32),
        grid=grid,
        in_specs=[
            pl.BlockSpec((TM, Dp), xmap),   # x rows (pipelined; constant over the inner class loop)
            pl.BlockSpec((Dp, TN), wmap),   # weight class tile (pipelined)
            pl.BlockSpec((TM, 1), rmap),    # x row norms
            pl.BlockSpec((TM, 1), rmap),    # ||W_y|| per row
            pl.BlockSpec((TM, 1), rmap),    # f32 target-column dot per row
            pl.BlockSpec((TM, 1), rmap),    # targets
        ],
        out_specs=pl.BlockSpec((TM, TN), omap),
        compiler_params=pltpu.CompilerParams(
            dimension_semantics=("parallel", "parallel"),   # no reduction axis; megacore-shardable
            vmem_limit_bytes=vmem_limit,
        ),
    )(x_mx, prepared["w_mx"], x_norm_p, wyi_norm_p, logit_yi_p, t_p)

    return out[:N, :C]


def _reference(x, w, targets, margin, lambdas):
    """Pure-JAX replica of the PyTorch forward for correctness checking."""
    logit = x @ w
    N = x.shape[0]
    idx = jnp.arange(N)
    logit_yi = logit[idx, targets]
    Wyi_norm = jnp.linalg.norm(w[:, targets], axis=0)
    x_norm = jnp.linalg.norm(x, axis=1)
    cos = logit_yi / (Wyi_norm * x_norm + 1e-10)
    sin2 = 1.0 - cos ** 2
    n_terms = margin // 2 + 1
    C_m_2n = jnp.array([math.comb(margin, 2 * n) for n in range(n_terms)], jnp.float32)
    cos_pows = jnp.array([margin - 2 * n for n in range(n_terms)], jnp.float32)
    sin2_pows = jnp.arange(n_terms, dtype=jnp.float32)
    signs = jnp.array([1.0 if n % 2 == 0 else -1.0 for n in range(n_terms)], jnp.float32)
    cos_m = jnp.sum(signs[None] * C_m_2n[None]
                    * (cos[:, None] ** cos_pows[None])
                    * (sin2[:, None] ** sin2_pows[None]), axis=1)
    eps = 1e-7
    k = jnp.floor(jnp.arccos(jnp.clip(cos, -1 + eps, 1 - eps)) * margin / math.pi)
    sign_k = 1.0 - 2.0 * (k % 2.0)
    psi = sign_k * cos_m - 2.0 * k
    fyi = (Wyi_norm * x_norm * psi + lambdas * logit_yi) / (1.0 + lambdas)
    return logit.at[idx, targets].set(fyi)


if __name__ == "__main__":
    key = jax.random.PRNGKey(0)
    N, feat_dim, num_classes, margin = 8, 32, 16, 4
    kx, kw, kt = jax.random.split(key, 3)

    x = jax.random.normal(kx, (N, feat_dim), dtype=jnp.float32)
    # kaiming_normal_ (fan_in mode): for a (feat_dim, num_classes) tensor PyTorch's fan_in is
    # num_classes, so std = sqrt(2 / num_classes).
    std = math.sqrt(2.0 / num_classes)
    weight = std * jax.random.normal(kw, (feat_dim, num_classes), dtype=jnp.float32)
    targets = jax.random.randint(kt, (N,), 0, num_classes, dtype=jnp.int32)

    # First forward call: lambdas = max(lambdas_start=100, lambdas_min=0) = 100.
    # TODO(synk): the lambdas_start *= 0.99 decay is Python-side training state, kept outside the kernel.
    lambdas = 100.0

    ref = _reference(x, weight, targets, margin, lambdas)

    # Exact-semantics path (f32 MXU): tight check against the pure-JAX reference.
    prep_f32 = prepare_lsoftmax_weight(weight, mxu_dtype=jnp.float32)
    out_f32 = jax.block_until_ready(lsoftmax_linear(x, targets, prep_f32, margin, lambdas))
    assert out_f32.shape == (N, num_classes) and out_f32.dtype == jnp.float32
    assert jnp.allclose(out_f32, ref, atol=1e-4, rtol=1e-4), "f32 path mismatch vs reference"

    # Fast path (bf16 MXU on v6e/v7x): looser tolerance for bf16 matmul drift on the off-target
    # logits; the target column itself is rewritten from f32 wrapper-side scalars.
    prep_bf16 = prepare_lsoftmax_weight(weight, mxu_dtype=jnp.bfloat16)
    out_bf16 = jax.block_until_ready(lsoftmax_linear(x, targets, prep_bf16, margin, lambdas))
    assert out_bf16.shape == (N, num_classes) and out_bf16.dtype == jnp.float32
    assert jnp.allclose(out_bf16, ref, atol=1e-1, rtol=1e-1), "bf16 path drift too large"

    print("KERNEL_OK")
</pallas_src>

<mosaic_0001>
module attributes {stable_mosaic.version = 11 : i64} {
  func.func @kernel(%arg0: i32, %arg1: i32, %arg2: memref<8x128xf32, #tpu.memory_space<vmem>>, %arg3: memref<128x256xf32, #tpu.memory_space<vmem>>, %arg4: memref<8x1xf32, #tpu.memory_space<vmem>>, %arg5: memref<8x1xf32, #tpu.memory_space<vmem>>, %arg6: memref<8x1xf32, #tpu.memory_space<vmem>>, %arg7: memref<8x1xi32, #tpu.memory_space<vmem>>, %arg8: memref<8x256xf32, #tpu.memory_space<vmem>>) attributes {dimension_semantics = [#tpu.dimension_semantics<parallel>, #tpu.dimension_semantics<parallel>], iteration_bounds = array<i64: 1, 1>, scalar_prefetch = 0 : i64, scratch_operands = 0 : i64, tpu.core_type = #tpu.core_type<tc>, window_params = [{transform_indices = @transform_0, window_bounds = array<i64: 8, 128>}, {transform_indices = @transform_1, window_bounds = array<i64: 128, 256>}, {transform_indices = @transform_2, window_bounds = array<i64: 8, 1>}, {transform_indices = @transform_3, window_bounds = array<i64: 8, 1>}, {transform_indices = @transform_4, window_bounds = array<i64: 8, 1>}, {transform_indices = @transform_5, window_bounds = array<i64: 8, 1>}, {transform_indices = @transform_6, window_bounds = array<i64: 8, 256>}]} {
    %c0 = arith.constant 0 : index
    %c0_0 = arith.constant 0 : index
    %0 = vector.load %arg2[%c0, %c0_0] : memref<8x128xf32, #tpu.memory_space<vmem>>, vector<8x128xf32>
    %c0_1 = arith.constant 0 : index
    %c0_2 = arith.constant 0 : index
    %1 = vector.load %arg3[%c0_1, %c0_2] : memref<128x256xf32, #tpu.memory_space<vmem>>, vector<128x256xf32>
    %cst = arith.constant dense<0.000000e+00> : vector<8x256xf32>
    %2 = tpu.matmul %0, %1, %cst {dimension_numbers = #tpu.dot_dimension_numbers<[1], [0], [0], [1], [0, 0, 1, 1], [], []>} : vector<8x128xf32>, vector<128x256xf32>, vector<8x256xf32> -> vector<8x256xf32>
    %c256_i32 = arith.constant 256 : i32
    %3 = arith.muli %arg1, %c256_i32 : i32
    %4 = tpu.iota {dimensions = array<i32: 1>} : vector<8x256xi32>
    %5 = vector.broadcast %3 : i32 to vector<8x256xi32>
    %6 = arith.addi %5, %4 : vector<8x256xi32>
    %c0_3 = arith.constant 0 : index
    %c0_4 = arith.constant 0 : index
    %7 = vector.load %arg7[%c0_3, %c0_4] : memref<8x1xi32, #tpu.memory_space<vmem>>, vector<8x1xi32>
    %8 = vector.broadcast %7 : vector<8x1xi32> to vector<8x256xi32>
    %9 = arith.cmpi eq, %6, %8 : vector<8x256xi32>
    %c0_5 = arith.constant 0 : index
    %c0_6 = arith.constant 0 : index
    %10 = vector.load %arg4[%c0_5, %c0_6] : memref<8x1xf32, #tpu.memory_space<vmem>>, vector<8x1xf32>
    %c0_7 = arith.constant 0 : index
    %c0_8 = arith.constant 0 : index
    %11 = vector.load %arg5[%c0_7, %c0_8] : memref<8x1xf32, #tpu.memory_space<vmem>>, vector<8x1xf32>
    %c0_9 = arith.constant 0 : index
    %c0_10 = arith.constant 0 : index
    %12 = vector.load %arg6[%c0_9, %c0_10] : memref<8x1xf32, #tpu.memory_space<vmem>>, vector<8x1xf32>
    %13 = arith.mulf %11, %10 : vector<8x1xf32>
    %cst_11 = arith.constant 1.000000e-10 : f32
    %14 = vector.broadcast %cst_11 : f32 to vector<8x1xf32>
    %15 = arith.addf %13, %14 : vector<8x1xf32>
    %16 = arith.divf %12, %15 : vector<8x1xf32>
    %cst_12 = arith.constant -0.99999988 : f32
    %cst_13 = arith.constant 0.99999988 : f32
    %17 = vector.broadcast %cst_12 : f32 to vector<8x1xf32>
    %18 = arith.maximumf %17, %16 : vector<8x1xf32>
    %19 = vector.broadcast %cst_13 : f32 to vector<8x1xf32>
    %20 = arith.minimumf %19, %18 : vector<8x1xf32>
    %21 = arith.mulf %20, %20 : vector<8x1xf32>
    %cst_14 = arith.constant 1.000000e+00 : f32
    %22 = vector.broadcast %cst_14 : f32 to vector<8x1xf32>
    %23 = arith.subf %22, %21 : vector<8x1xf32>
    %cst_15 = arith.constant 1.000000e+00 : f32
    %24 = vector.broadcast %cst_15 : f32 to vector<8x1xf32>
    %cst_16 = arith.constant 1.000000e+00 : f32
    %25 = vector.broadcast %cst_16 : f32 to vector<8x1xf32>
    %26 = arith.mulf %24, %21 : vector<8x1xf32>
    %27 = arith.mulf %25, %23 : vector<8x1xf32>
    %28 = arith.mulf %26, %21 : vector<8x1xf32>
    %29 = arith.mulf %27, %23 : vector<8x1xf32>
    %cst_17 = arith.constant 0.000000e+00 : f32
    %30 = vector.broadcast %cst_17 : f32 to vector<8x1xf32>
    %cst_18 = arith.constant 1.000000e+00 : f32
    %31 = vector.broadcast %cst_18 : f32 to vector<8x1xf32>
    %32 = arith.mulf %31, %28 : vector<8x1xf32>
    %33 = arith.mulf %32, %25 : vector<8x1xf32>
    %34 = arith.addf %30, %33 : vector<8x1xf32>
    %cst_19 = arith.constant -6.000000e+00 : f32
    %35 = vector.broadcast %cst_19 : f32 to vector<8x1xf32>
    %36 = arith.mulf %35, %26 : vector<8x1xf32>
    %37 = arith.mulf %36, %27 : vector<8x1xf32>
    %38 = arith.addf %34, %37 : vector<8x1xf32>
    %cst_20 = arith.constant 1.000000e+00 : f32
    %39 = vector.broadcast %cst_20 : f32 to vector<8x1xf32>
    %40 = arith.mulf %39, %24 : vector<8x1xf32>
    %41 = arith.mulf %40, %29 : vector<8x1xf32>
    %42 = arith.addf %38, %41 : vector<8x1xf32>
    %cst_21 = arith.constant 0.000000e+00 : f32
    %43 = vector.broadcast %cst_21 : f32 to vector<8x1xf32>
    %cst_22 = arith.constant 0.707106769 : f32
    %44 = vector.broadcast %cst_22 : f32 to vector<8x1xf32>
    %45 = arith.cmpf ole, %20, %44 : vector<8x1xf32>
    %cst_23 = arith.constant 1.000000e+00 : f32
    %cst_24 = arith.constant 0.000000e+00 : f32
    %46 = vector.broadcast %cst_23 : f32 to vector<8x1xf32>
    %47 = vector.broadcast %cst_24 : f32 to vector<8x1xf32>
    %48 = arith.select %45, %46, %47 : vector<8x1xi1>, vector<8x1xf32>
    %49 = arith.addf %43, %48 : vector<8x1xf32>
    %cst_25 = arith.constant 6.12323426E-17 : f32
    %50 = vector.broadcast %cst_25 : f32 to vector<8x1xf32>
    %51 = arith.cmpf ole, %20, %50 : vector<8x1xf32>
    %cst_26 = arith.constant 1.000000e+00 : f32
    %cst_27 = arith.constant 0.000000e+00 : f32
    %52 = vector.broadcast %cst_26 : f32 to vector<8x1xf32>
    %53 = vector.broadcast %cst_27 : f32 to vector<8x1xf32>
    %54 = arith.select %51, %52, %53 : vector<8x1xi1>, vector<8x1xf32>
    %55 = arith.addf %49, %54 : vector<8x1xf32>
    %cst_28 = arith.constant -0.707106769 : f32
    %56 = vector.broadcast %cst_28 : f32 to vector<8x1xf32>
    %57 = arith.cmpf ole, %20, %56 : vector<8x1xf32>
    %cst_29 = arith.constant 1.000000e+00 : f32
    %cst_30 = arith.constant 0.000000e+00 : f32
    %58 = vector.broadcast %cst_29 : f32 to vector<8x1xf32>
    %59 = vector.broadcast %cst_30 : f32 to vector<8x1xf32>
    %60 = arith.select %57, %58, %59 : vector<8x1xi1>, vector<8x1xf32>
    %61 = arith.addf %55, %60 : vector<8x1xf32>
    %cst_31 = arith.constant 2.000000e+00 : f32
    %62 = vector.broadcast %cst_31 : f32 to vector<8x1xf32>
    %63 = arith.remf %61, %62 : vector<8x1xf32>
    %cst_32 = arith.constant 0.000000e+00 : f32
    %64 = vector.broadcast %cst_32 : f32 to vector<8x1xf32>
    %65 = arith.cmpf one, %63, %64 : vector<8x1xf32>
    %cst_33 = arith.constant 0.000000e+00 : f32
    %66 = vector.broadcast %cst_33 : f32 to vector<8x1xf32>
    %67 = arith.cmpf olt, %63, %66 : vector<8x1xf32>
    %cst_34 = arith.constant 0.000000e+00 : f32
    %68 = arith.cmpf olt, %cst_31, %cst_34 : f32
    %69 = vector.broadcast %68 : i1 to vector<8x1xi1>
    %70 = vector.broadcast %69 : vector<8x1xi1> to vector<8x1xi1>
    %71 = arith.xori %67, %70 : vector<8x1xi1>
    %72 = arith.andi %71, %65 : vector<8x1xi1>
    %73 = vector.broadcast %cst_31 : f32 to vector<8x1xf32>
    %74 = arith.addf %63, %73 : vector<8x1xf32>
    %75 = arith.select %72, %74, %63 : vector<8x1xi1>, vector<8x1xf32>
    %cst_35 = arith.constant 2.000000e+00 : f32
    %76 = vector.broadcast %cst_35 : f32 to vector<8x1xf32>
    %77 = arith.mulf %76, %75 : vector<8x1xf32>
    %cst_36 = arith.constant 1.000000e+00 : f32
    %78 = vector.broadcast %cst_36 : f32 to vector<8x1xf32>
    %79 = arith.subf %78, %77 : vector<8x1xf32>
    %80 = arith.mulf %79, %42 : vector<8x1xf32>
    %cst_37 = arith.constant 2.000000e+00 : f32
    %81 = vector.broadcast %cst_37 : f32 to vector<8x1xf32>
    %82 = arith.mulf %81, %61 : vector<8x1xf32>
    %83 = arith.subf %80, %82 : vector<8x1xf32>
    %84 = arith.mulf %13, %83 : vector<8x1xf32>
    %cst_38 = arith.constant 1.000000e+02 : f32
    %85 = vector.broadcast %cst_38 : f32 to vector<8x1xf32>
    %86 = arith.mulf %85, %12 : vector<8x1xf32>
    %87 = arith.addf %84, %86 : vector<8x1xf32>
    %cst_39 = arith.constant 9.900990e-03 : f32
    %88 = vector.broadcast %cst_39 : f32 to vector<8x1xf32>
    %89 = arith.mulf %87, %88 : vector<8x1xf32>
    %90 = vector.shape_cast %89 : vector<8x1xf32> to vector<8x1xf32>
    %91 = vector.broadcast %90 : vector<8x1xf32> to vector<8x256xf32>
    %92 = arith.select %9, %91, %2 : vector<8x256xi1>, vector<8x256xf32>
    %c0_40 = arith.constant 0 : index
    %c0_41 = arith.constant 0 : index
    %93 = vector.load %arg8[%c0_40, %c0_41] : memref<8x256xf32, #tpu.memory_space<vmem>>, vector<8x256xf32>
    tpu.vector_store %arg8[%c0_40, %c0_41], %92 {strides = array<i32>} : memref<8x256xf32, #tpu.memory_space<vmem>>, vector<8x256xf32>,
    return
  }
  func.func @transform_0(%arg0: i32, %arg1: i32) -> (i32, i32) {
    %c0_i32 = arith.constant 0 : i32
    %c0_i32_0 = arith.constant 0 : i32
    return %arg0, %c0_i32 : i32, i32
  }
  func.func @transform_1(%arg0: i32, %arg1: i32) -> (i32, i32) {
    %c0_i32 = arith.constant 0 : i32
    %c0_i32_0 = arith.constant 0 : i32
    return %c0_i32, %arg1 : i32, i32
  }
  func.func @transform_2(%arg0: i32, %arg1: i32) -> (i32, i32) {
    %c0_i32 = arith.constant 0 : i32
    %c0_i32_0 = arith.constant 0 : i32
    return %arg0, %c0_i32 : i32, i32
  }
  func.func @transform_3(%arg0: i32, %arg1: i32) -> (i32, i32) {
    %c0_i32 = arith.constant 0 : i32
    %c0_i32_0 = arith.constant 0 : i32
    return %arg0, %c0_i32 : i32, i32
  }
  func.func @transform_4(%arg0: i32, %arg1: i32) -> (i32, i32) {
    %c0_i32 = arith.constant 0 : i32
    %c0_i32_0 = arith.constant 0 : i32
    return %arg0, %c0_i32 : i32, i32
  }
  func.func @transform_5(%arg0: i32, %arg1: i32) -> (i32, i32) {
    %c0_i32 = arith.constant 0 : i32
    %c0_i32_0 = arith.constant 0 : i32
    return %arg0, %c0_i32 : i32, i32
  }
  func.func @transform_6(%arg0: i32, %arg1: i32) -> (i32, i32) {
    %c0_i32 = arith.constant 0 : i32
    return %arg0, %arg1 : i32, i32
  }
}

</mosaic_0001>

<bundles_post_ra>
// kernel: tpu_custom_call.1
= control target key start
LH: loop header
LB: loop body
LE: loop exit
PB: predicated region body
PF: predicated region fallthrough
CT: control target
= control target key end

     0   :  { %11 = vsyncpa [#allocation3], 0  ;;  %s409_s0 = inlined_call_operand.vmem [shape: f32[8,128], index: 0, kind: input, shape index: {}]   ;;  %s410_s1 = inlined_call_operand.hbm [shape: f32[128,256], index: 1, kind: input, shape index: {}]   ;;  %s411_s2 = inlined_call_operand.vmem [shape: f32[8,1], index: 2, kind: input, shape index: {}]   ;;  %s412_s3 = inlined_call_operand.vmem [shape: f32[8,1], index: 3, kind: input, shape index: {}]   ;;  %s413_s4 = inlined_call_operand.vmem [shape: f32[8,1], index: 4, kind: input, shape index: {}]   ;;  %s414_s5 = inlined_call_operand.vmem [shape: s32[8,1], index: 5, kind: input, shape index: {}]   ;;  %s415_s6 = inlined_call_operand.hbm [shape: f32[8,256], index: 6, kind: output, shape index: {}]  }
   0x1   :  { %12 = vsyncpa [#allocation4], 0  ;;  %s321_s21 = smov [#allocation2]   ;;  %s273_s25 = scalar_lea.hbm %s410_s1, 4096 }
   0x2   :  { %s20_s22 = sshll.u32 %s321_s21, 4  ;;  %p274_p0 = scmp.ne.s32.totalorder %s410_s1, %s273_s25  ;;  %s21_s22 = int_to_ptr.vmem [resolvable:$true] %s20_s22 }
   0x3   :  { %p277_p1 = scmp.lt.u32.totalorder %s273_s25, %s410_s1 }
   0x5   :  { %p279_p2 = pnand %p277_p1, %p274_p0 }
   0x7   :  { %282 = shalt.err (!%p279_p2)
}
   0x8   :  { %s283_s30 = scalar_lea.vmem %s21_s22, 4096  ;;  %p288_p4 = scmp.lt.s32.totalorder %s21_s22, %s21_s22 }
   0x9   :  { %p284_p3 = scmp.ne.s32.totalorder %s21_s22, %s283_s30  ;;  %p289_p5 = scmp.lt.s32.totalorder %s283_s30, %s283_s30 }
   0xb   :  { %p290_p6 = por %p289_p5, %p288_p4 }
   0xd   :  { %p291_p7 = pnand %p290_p6, %p284_p3 }
   0xf   :  { %294 = shalt.err (!%p291_p7)
}
  0x10   :  { %s322_s7 = smov 256   ;;  %s323_s8 = smov 16  }
  0x11   :  { %26 = dma.hbm_to_vmem [thread:$0]  %s410_s1, 4096, %s21_s22, [#allocation3], %s322_s7, %s322_s7, %s323_s8  }
  0x12   :  { %317 = dma.done.wait [#allocation3], 4096  }
  0x13   :  { %318 = vsyncadd [#allocation3], 4294963200  ;;  %v324_v0 = vmov 0.0   ;;  %v325_v1 = vmov 0   ;;  %v40_v2 = vld [vmem:[#allocation2 + $0x8] sm:$0xff]  ;;  %v42_v3 = vld [vmem:[#allocation2 + $0x18] sm:$0xff] }
  0x14   :  { %135 = vmatprep.mubr.f32.mxu0 %v324_v0  ;;  %270 = vset.pattern.permute.xlu0 %v325_v1  ;;  %v39_v4 = vld [vmem:[#allocation2] sm:$0xff]  ;;  %v232_v5 = vpack.c.bf16 %v42_v3, %v40_v2  ;;  %v41_v6 = vld [vmem:[#allocation2 + $0x10] sm:$0xff]  ;;  %v44_v7 = vld [vmem:[#allocation2 + $0x28] sm:$0xff] }
  0x15   :  { %v46_v8 = vld [vmem:[#allocation2 + $0x38] sm:$0xff]  ;;  %v234_v9 = vpack.c.bf16 %v41_v6, %v39_v4  ;;  %v43_v11 = vld [vmem:[#allocation2 + $0x20] sm:$0xff]  ;;  %v45_v12 = vld [vmem:[#allocation2 + $0x30] sm:$0xff] }
  0x16   :  { %v236_v10 = vpack.c.bf16 %v46_v8, %v44_v7  ;;  %v48_v13 = vld [vmem:[#allocation2 + $0x48] sm:$0xff]  ;;  %233 = vmatprep.subr.bf16.mxu0 %v232_v5  ;;  %v50_v14 = vld [vmem:[#allocation2 + $0x58] sm:$0xff]  ;;  %v238_v15 = vpack.c.bf16 %v45_v12, %v43_v11  ;;  %v47_v17 = vld [vmem:[#allocation2 + $0x40] sm:$0xff] }
  0x17   :  { %235 = vmatpush1.bf16.msra.mxu0 %v234_v9  ;;  %v240_v16 = vpack.c.bf16 %v50_v14, %v48_v13  ;;  %v49_v18 = vld [vmem:[#allocation2 + $0x50] sm:$0xff]  ;;  %v52_v19 = vld [vmem:[#allocation2 + $0x68] sm:$0xff]  ;;  %v54_v20 = vld [vmem:[#allocation2 + $0x78] sm:$0xff] }
  0x18   :  { %237 = vmatprep.subr.bf16.mxu0 %v236_v10  ;;  %v242_v21 = vpack.c.bf16 %v49_v18, %v47_v17  ;;  %v244_v22 = vpack.c.bf16 %v54_v20, %v52_v19  ;;  %v51_v23 = vld [vmem:[#allocation2 + $0x60] sm:$0xff]  ;;  %v53_v24 = vld [vmem:[#allocation2 + $0x70] sm:$0xff]  ;;  %v56_v25 = vld [vmem:[#allocation2 + $0x88] sm:$0xff] }
  0x19   :  { %v58_v26 = vld [vmem:[#allocation2 + $0x98] sm:$0xff]  ;;  %v155_v27 = vld [vmem:[%s411_s2] sm:$0xff]  ;;  %v246_v29 = vpack.c.bf16 %v53_v24, %v51_v23  ;;  %v57_v34 = vld [vmem:[#allocation2 + $0x90] sm:$0xff] }
  0x1a   :  { %v156_v28 = vld [vmem:[%s412_s3] sm:$0xff]  ;;  %v248_v32 = vpack.c.bf16 %v58_v26, %v56_v25  ;;  %v60_v35 = vld [vmem:[#allocation2 + $0xa8] sm:$0xff]  ;;  %v62_v36 = vld [vmem:[#allocation2 + $0xb8] sm:$0xff] }
  0x1b   :  { %239 = vmatpush1.bf16.msra.mxu0 %v238_v15  ;;  %v381_v30 = vmul.f32 %v156_v28, %v155_v27  ;;  %v149_v31 = vld [vmem:[%s414_s5] sm:$0xff]  ;;  %v252_v39 = vpack.c.bf16 %v62_v36, %v60_v35  ;;  %v61_v41 = vld [vmem:[#allocation2 + $0xb0] sm:$0xff]  ;;  %v64_v42 = vld [vmem:[#allocation2 + $0xc8] sm:$0xff] }
  0x1c   :  { %241 = vmatprep.subr.bf16.mxu0 %v240_v16  ;;  %v55_v33 = vld [vmem:[#allocation2 + $0x80] sm:$0xff]  ;;  %151 = vperm.xlu0 %270, %v149_v31   ;;  %v66_v43 = vld [vmem:[#allocation2 + $0xd8] sm:$0xff]  ;;  %v65_v47 = vld [vmem:[#allocation2 + $0xd0] sm:$0xff] }
  0x1d   :  { %v159_v37 = vadd.f32 1e-10, %v381_v30  ;;  %v250_v38 = vpack.c.bf16 %v57_v34, %v55_v33  ;;  %v59_v40 = vld [vmem:[#allocation2 + $0xa0] sm:$0xff]  ;;  %v256_v45 = vpack.c.bf16 %v66_v43, %v64_v42  ;;  %v68_v48 = vld [vmem:[#allocation2 + $0xe8] sm:$0xff]  ;;  %v70_v49 = vld [vmem:[#allocation2 + $0xf8] sm:$0xff] }
  0x1e   :  { %v254_v44 = vpack.c.bf16 %v61_v41, %v59_v40  ;;  %v63_v46 = vld [vmem:[#allocation2 + $0xc0] sm:$0xff]  ;;  %v260_v52 = vpack.c.bf16 %v70_v49, %v68_v48  ;;  %v69_v54 = vld [vmem:[#allocation2 + $0xf0] sm:$0xff] }
  0x1f   :  { %243 = vmatpush1.bf16.msra.mxu0 %v242_v21  ;;  %271 = vrcp.f32 %v159_v37  ;;  %v258_v50 = vpack.c.bf16 %v65_v47, %v63_v46  ;;  %v157_v51 = vld [vmem:[%s413_s4] sm:$0xff] }
  0x20   :  { %245 = vmatprep.subr.bf16.mxu0 %v244_v22  ;;  %v67_v53 = vld [vmem:[#allocation2 + $0xe0] sm:$0xff]  ;;  %v204_v25 = vmul.f32 100.0, %v157_v51 }
  0x21   :  { %v262_v57 = vpack.c.bf16 %v69_v54, %v67_v53  ;;  %v38_v62 = vld [vmem:[%s409_s0] sm:$0xff]  ;;  %s326_s0 = smov [#allocation5]  }
  0x22   :  { %s222_s16 = sshll.u32 %s326_s0, 4  ;;  %s223_s16 = int_to_ptr.vmem [resolvable:$true] %s222_s16 }
  0x23   :  { %247 = vmatpush1.bf16.msra.mxu0 %v246_v29  ;;  %v143_v29 = vlaneseq  ;;  %s295_s17 = scalar_lea.vmem %s223_s16, 256  ;;  %p300_p9 = scmp.lt.s32.totalorder %s223_s16, %s223_s16 }
  0x24   :  { %249 = vmatprep.subr.bf16.mxu0 %v248_v32  ;;  %p296_p8 = scmp.ne.s32.totalorder %s223_s16, %s295_s17  ;;  %p301_p10 = scmp.lt.s32.totalorder %s295_s17, %s295_s17 }
  0x25   :  { %v144_v31 = vand.u32 127, %v143_v29 }
  0x26   :  { %p302_p11 = por %p301_p10, %p300_p9 }
  0x27   :  { %251 = vmatpush1.bf16.msra.mxu0 %v250_v38  ;;  %v145_v33 = vadd.s32 128, %v144_v31 }
  0x28   :  { %253 = vmatprep.subr.bf16.mxu0 %v252_v39  ;;  %p303_p12 = pnand %p302_p11, %p296_p8 }
  0x29   :  { %v272_v55 = vpop.eup %271 }
  0x2a   :  { %v161_v56 = vmul.f32 %v272_v55, %v157_v51 }
  0x2b   :  { %255 = vmatpush1.bf16.msra.mxu0 %v254_v44 }
  0x2c   :  { %257 = vmatprep.subr.bf16.mxu0 %v256_v45  ;;  %v231_v58 = vclamps-f32 %v161_v56, 0.9999999 }
  0x2e   :  { %vm173_vm0 = vcmp.le.f32.partialorder %v231_v58, 0.70710677  ;;  %vm176_vm1 = vcmp.le.f32.partialorder %v231_v58, 6.123234e-17  ;;  %vm179_vm2 = vcmp.le.f32.partialorder %v231_v58, -0.70710677  ;;  %v164_v4 = vmul.f32 %v231_v58, %v231_v58 }
  0x2f   :  { %259 = vmatpush1.bf16.msra.mxu0 %v258_v50  ;;  %v174_v59 = vsel %vm173_vm0, 1.0, %v324_v0  ;;  %v177_v60 = vsel %vm176_vm1, 1.0, %v324_v0  ;;  %v180_v61 = vsel %vm179_vm2, 1.0, %v324_v0 }
  0x30   :  { %261 = vmatprep.subr.bf16.mxu0 %v260_v52  ;;  %v178_v63 = vadd.f32 %v177_v60, %v174_v59  ;;  %v165_v7 = vsub.f32 1.0, %v164_v4  ;;  %v169_v8 = vmul.f32 -6.0, %v164_v4  ;;  %v166_v12 = vmul.f32 %v164_v4, %v164_v4 }
  0x32   :  { %v181_v1 = vadd.f32 %v180_v61, %v178_v63  ;;  %v170_v0 = vmul.f32 %v169_v8, %v165_v7  ;;  %v167_v15 = vmul.f32 %v165_v7, %v165_v7 }
  0x33   :  { %263 = vmatpush1.bf16.msra.mxu0 %v262_v57 }
  0x34   :  { %v182_v2 = vand.u32 2147483647, %v181_v1  ;;  %v191_v10 = vand.u32 2147483648, %v181_v1  ;;  %v171_v16 = vadd.f32 %v170_v0, %v166_v12  ;;  %v201_v22 = vmul.f32 2.0, %v181_v1 }
  0x36   :  { %136 = vmatmul.mubr.f32.vlgmr.msra.gmra.mrb[0].mxu0 %v38_v62  ;;  %v184_v3 = vmul.f32 0.5, %v182_v2  ;;  %v172_v19 = vadd.f32 %v171_v16, %v167_v15 }
  0x38   :  { %v185_v5 = vfloor.f32 %v184_v3 }
  0x3a   :  { %v186_v6 = vmul.f32 2.0, %v185_v5 }
  0x3c   :  { %v187_v9 = vsub.f32 %v182_v2, %v186_v6 }
  0x3e   :  { %vm188_vm3 = vcmp.eq.f32.partialorder %v187_v9, 2.0 }
  0x3f   :  { %v189_v11 = vsel %vm188_vm3, 0.0, %v187_v9 }
  0x40   :  { %v190_v13 = vand.u32 2147483647, %v189_v11 }
  0x42   :  { %v192_v14 = vor.u32 %v191_v10, %v190_v13 }
  0x44   :  { %vm193_vm4 = vcmp.ne.f32.partialorder %v192_v14, 0.0  ;;  %vm194_vm5 = vcmp.lt.f32.partialorder %v192_v14, 0.0  ;;  %v196_v17 = vadd.f32 2.0, %v192_v14 }
  0x45   :  { %vm195_vm6 = vmand %vm194_vm5, %vm193_vm4 }
  0x46   :  { %v197_v18 = vsel %vm195_vm6, %v196_v17, %v192_v14 }
  0x47   :  { %v198_v20 = vmul.f32 2.0, %v197_v18 }
  0x49   :  { %v199_v21 = vsub.f32 1.0, %v198_v20 }
  0x4b   :  { %v200_v23 = vmul.f32 %v199_v21, %v172_v19 }
  0x4d   :  { %v202_v24 = vsub.f32 %v200_v23, %v201_v22 }
  0x4f   :  { %v203_v26 = vmul.f32 %v202_v24, %v381_v30 }
  0x51   :  { %v205_v27 = vadd.f32 %v204_v25, %v203_v26 }
  0x53   :  { %v206_v28 = vmul.f32 0.00990099, %v205_v27 }
  0x55   :  { %209 = vperm.xlu0 %270, %v206_v28  }
  0x9b   :  { %v152_v32 = vpop.permute.xlu0 %151 }
  0x9c   :  { %vm153_vm7 = vcmp.eq.s32.totalorder %v144_v31, %v152_v32  ;;  %vm154_vm8 = vcmp.eq.s32.totalorder %v145_v33, %v152_v32 }
  0xd4   :  { %v210_v34 = vpop.permute.xlu0 %209 }
 0x109   :  { %v137_v35 = vpop.f32.mrb[0].mxu0 }
 0x10a   :  { %v212_v36 = vsel %vm153_vm7, %v210_v34, %v137_v35  ;;  %v139_v37 = vpop.f32.mrb[1].mxu0 }
 0x10b   :  { %214 = vst [vmem:[#allocation5] sm:$0xff] %v212_v36  ;;  %v213_v38 = vsel %vm154_vm8, %v210_v34, %v139_v37 }
 0x10c   :  { %215 = vst [vmem:[#allocation5 + $0x8] sm:$0xff] %v213_v38 }
 0x10d   :  { %306 = shalt.err (!%p303_p12)
}
 0x10e   :  { %s307_s20 = scalar_lea.hbm %s415_s6, 256 }
 0x10f   :  { %p308_p13 = scmp.ne.s32.totalorder %s415_s6, %s307_s20  ;;  %p311_p0 = scmp.lt.u32.totalorder %s307_s20, %s415_s6 }
 0x111   :  { %p313_p1 = pnand %p311_p0, %p308_p13 }
 0x113   :  { %316 = shalt.err (!%p313_p1)
}
 0x114   :  { %225 = dma.vmem_to_hbm [thread:$0]  %s223_s16, 256, %s415_s6, [#allocation4]  }
 0x115   :  { %319 = dma.done.wait [#allocation4], 256  }
 0x116   :  { %320 = vsyncadd [#allocation4], 4294967040 }
 0x117   :  { %229 = vsyncpa [#allocation3], 1 }
 0x118   :  { %230 = vsyncpa [#allocation4], 1 }

</bundles_post_ra>
